<compile_context>
chip_gen: v7x
topology: tpu7x:2x2x1
jax: 0.10.0
libtpu: 0.0.40
codegen_flags: <defaults>
</compile_context>

<pallas_src>
import functools

import numpy as np
import jax
import jax.numpy as jnp
from jax import lax
from jax.experimental import pallas as pl
from jax.experimental.pallas import tpu as pltpu


def _temporal_residual_kernel(*refs, runs, C_in, T_out, bb, has_res_input):
    """Conv1d(+bias) with residual folded into the weights, one batch tile.

    refs (in order):
      x_ref   : [bb, T_rows, stride*C_in]  phase-major zero-padded input
      (res_ref: [bb, T_out, C_in]          only for non-uniform nearest idx)
      w_ref   : [n_taps*C_in, C_out]       im2col weight (+ identity fold)
      b_ref   : [1, C_out]
      o_ref   : [bb, T_out, C_out]
    """
    if has_res_input:
        x_ref, res_ref, w_ref, b_ref, o_ref = refs
    else:
        x_ref, w_ref, b_ref, o_ref = refs
        res_ref = None

    C_out = o_ref.shape[-1]
    n_taps = w_ref.shape[0] // C_in

    # im2col: each run is a contiguous (row, phase..phase+len) slice of the
    # phase-major buffer; concatenate runs along lanes -> [bb, T_out, n_taps*C].
    pieces = []
    for (row, phase, run_len) in runs:
        pieces.append(x_ref[:, row:row + T_out,
                            phase * C_in:(phase + run_len) * C_in])
    lhs = pieces[0] if len(pieces) == 1 else jnp.concatenate(pieces, axis=-1)
    lhs = lhs.reshape(bb * T_out, n_taps * C_in)   # fold batch into MXU M dim

    # Single MXU contraction over n_taps*C_in with f32 accumulation.  The
    # residual (nearest-neighbour resample) is already folded into w_ref.
    acc = jnp.dot(lhs, w_ref[...], preferred_element_type=jnp.float32)
    acc = acc + b_ref[...].astype(jnp.float32)     # bias broadcast over rows

    if res_ref is not None:  # fallback: non-uniform nearest indices
        acc = acc + res_ref[...].reshape(bb * T_out, C_in).astype(jnp.float32)

    o_ref[...] = acc.reshape(bb, T_out, C_out).astype(o_ref.dtype)


def _pick_batch_block(batch, t_out, target_rows=256):
    """Largest divisor of `batch` with bb*t_out <= target_rows while keeping
    >= 2 grid steps when batch >= 2 (so both v7x TensorCores get work)."""
    best = 1
    for bb in range(1, batch + 1):
        if batch % bb:
            continue
        if bb * t_out > max(target_rows, t_out):
            continue
        if batch // bb >= min(2, batch):
            best = bb
    return best


def temporal_residual_conv1d(x_nct, weight, bias, *, stride, padding,
                             batch_block=None, out_layout="NCT"):
    """TemporalResidual(Conv1d(C, C, K, stride, padding)) forward.

    x_nct  : [B, C, T]       (PyTorch NCT convention)
    weight : [C_out, C_in, K]
    bias   : [C_out]
    returns [B, C_out, T_out] (or [B, T_out, C_out] if out_layout == "NTC",
    which skips the final transpose for channels-last consumers).
    """
    B, C_in, T = x_nct.shape
    C_out, C_in_w, K = weight.shape
    assert C_in_w == C_in
    assert C_out == C_in, "residual add requires matching channel count"
    s = int(stride)
    p = int(padding)
    T_out = (T + 2 * p - K) // s + 1
    assert T_out >= 1

    # ---- static index plan --------------------------------------------------
    # Conv tap k reads padded index t*s + k == (t + k//s)*s + (k % s), i.e.
    # row offset k//s at phase k%s of the phase-major layout.
    tap_rp = [(k // s, k % s) for k in range(K)]

    # Nearest-neighbour residual indices (integer arithmetic, matches
    # torch.nn.functional.interpolate(mode='nearest')).
    ridx = np.arange(T_out, dtype=np.int64)
    if T_out != T:
        ridx = (ridx * T) // T_out
    diffs = np.diff(ridx)
    uniform = (T_out == 1) or bool(np.all(diffs == s))

    # im2col weight: row k*C_in + ci <-> weight[co, ci, k].
    w2 = jnp.transpose(weight, (2, 1, 0)).reshape(K * C_in, C_out)
    eye = jnp.eye(C_in, dtype=w2.dtype)

    res_rows_needed = 0
    if uniform:
        # Residual row t reads padded index first + t*s == conv tap `first`.
        first = int(ridx[0]) + p
        if 0 <= first < K:
            # Coincides with an existing conv tap: fold identity into it.
            w2 = w2.at[first * C_in:(first + 1) * C_in, :].add(eye)
        else:
            # Extra tap: append its (row, phase) and an identity weight block.
            tap_rp.append((first // s, first % s))
            w2 = jnp.concatenate([w2, eye], axis=0)
        res_rows_needed = first // s + T_out
    # else: non-uniform nearest indices -> residual gathered in the wrapper
    # and added in-kernel (second input stream).
    # TODO(synk): fold the non-uniform case into the GEMM via a selector matrix.

    # Merge lane-adjacent taps into contiguous runs (fewer concat operands).
    runs = []
    for (row, phase) in tap_rp:
        if runs and runs[-1][0] == row and runs[-1][1] + runs[-1][2] == phase:
            r0, p0, ln = runs[-1]
            runs[-1] = (r0, p0, ln + 1)
        else:
            runs.append((row, phase, 1))
    runs = tuple(runs)

    # Rows of the phase-major buffer: cover all taps (incl. folded residual
    # tap) and all of x.
    max_tap_row = max(r for r, _ in tap_rp)
    T_rows = max(max_tap_row + T_out, -(-(T + p) // s), res_rows_needed)
    pad_tail = T_rows * s - T - p
    assert pad_tail >= 0

    # ---- one fused layout pass in XLA ---------------------------------------
    x_ntc = jnp.transpose(x_nct, (0, 2, 1))                     # [B, T, C]
    x_pad = jnp.pad(x_ntc, ((0, 0), (p, pad_tail), (0, 0)))     # [B, T_rows*s, C]
    x_phase = x_pad.reshape(B, T_rows, s * C_in)                # [B, T_rows, s*C]

    b2 = bias.reshape(1, C_out)

    bb = batch_block if batch_block is not None else _pick_batch_block(B, T_out)
    assert B % bb == 0
    grid = (B // bb,)

    has_res_input = not uniform
    kernel = functools.partial(
        _temporal_residual_kernel, runs=runs, C_in=C_in, T_out=T_out, bb=bb,
        has_res_input=has_res_input)

    in_arrays = [x_phase]
    in_specs = [pl.BlockSpec((bb, T_rows, s * C_in), lambda i: (i, 0, 0))]
    if has_res_input:
        res_gather = jnp.take(x_ntc, jnp.asarray(ridx, jnp.int32), axis=1)
        in_arrays.append(res_gather)
        in_specs.append(pl.BlockSpec((bb, T_out, C_in), lambda i: (i, 0, 0)))
    n_taps = w2.shape[0] // C_in
    in_arrays += [w2, b2]
    in_specs += [pl.BlockSpec((n_taps * C_in, C_out), lambda i: (0, 0)),
                 pl.BlockSpec((1, C_out), lambda i: (0, 0))]

    # Blocks here are small; at production (C, T) sizes add a T_out grid axis
    # with halo rows (mandatory on v7x's 64 MiB VMEM) and set vmem_limit_bytes.
    # TODO(synk): T_out tiling axis with halo for large-T / large-C shapes.
    out_ntc = pl.pallas_call(
        kernel,
        out_shape=jax.ShapeDtypeStruct((B, T_out, C_out), x_nct.dtype),
        grid_spec=pltpu.PrefetchScalarGridSpec(
            num_scalar_prefetch=0,
            grid=grid,
            in_specs=in_specs,
            out_specs=pl.BlockSpec((bb, T_out, C_out), lambda i: (i, 0, 0)),
        ),
        compiler_params=pltpu.CompilerParams(
            dimension_semantics=("parallel",)),
    )(*in_arrays)

    if out_layout == "NTC":
        return out_ntc
    return jnp.transpose(out_ntc, (0, 2, 1))                    # back to NCT


if __name__ == "__main__":
    B, C, T = 2, 8, 16
    K, STRIDE, PADDING = 3, 2, 1

    key = jax.random.PRNGKey(0)
    kx, kw, kb = jax.random.split(key, 3)
    x = jax.random.normal(kx, (B, C, T), jnp.float32)
    w = 0.1 * jax.random.normal(kw, (C, C, K), jnp.float32)   # Conv1d weight [C_out, C_in, K]
    b = 0.1 * jax.random.normal(kb, (C,), jnp.float32)

    out = temporal_residual_conv1d(x, w, b, stride=STRIDE, padding=PADDING)
    out = jax.block_until_ready(out)

    # Plain-JAX reference for the TemporalResidual(Conv1d) forward pass.
    conv = lax.conv_general_dilated(
        x, w, window_strides=(STRIDE,), padding=[(PADDING, PADDING)],
        dimension_numbers=('NCH', 'OIH', 'NCH')) + b[None, :, None]
    T_out = conv.shape[-1]
    if T_out == T:
        res = x
    else:
        idx = (np.arange(T_out, dtype=np.int64) * T) // T_out
        res = jnp.take(x, jnp.asarray(idx, jnp.int32), axis=2)
    ref = conv + res

    np.testing.assert_allclose(np.asarray(out), np.asarray(ref), rtol=1e-4, atol=1e-4)
    print("KERNEL_OK")
</pallas_src>

<mosaic_0001>
module attributes {stable_mosaic.version = 11 : i64} {
  func.func @_temporal_residual_kernel(%arg0: i32, %arg1: memref<1x9x16xf32, #tpu.memory_space<vmem>>, %arg2: memref<24x8xf32, #tpu.memory_space<vmem>>, %arg3: memref<1x8xf32, #tpu.memory_space<vmem>>, %arg4: memref<1x8x8xf32, #tpu.memory_space<vmem>>) attributes {dimension_semantics = [#tpu.dimension_semantics<parallel>], iteration_bounds = array<i64: 2>, scalar_prefetch = 0 : i64, scratch_operands = 0 : i64, tpu.core_type = #tpu.core_type<tc>, window_params = [{transform_indices = @transform_0, window_bounds = array<i64: 1, 9, 16>}, {pipeline_mode = #tpu.pipeline_mode<synchronous>, transform_indices = @transform_1, window_bounds = array<i64: 24, 8>}, {pipeline_mode = #tpu.pipeline_mode<synchronous>, transform_indices = @transform_2, window_bounds = array<i64: 1, 8>}, {transform_indices = @transform_3, window_bounds = array<i64: 1, 8, 8>}]} {
    %c0 = arith.constant 0 : index
    %c0_0 = arith.constant 0 : index
    %c0_1 = arith.constant 0 : index
    %0 = vector.load %arg1[%c0, %c0_0, %c0_1] : memref<1x9x16xf32, #tpu.memory_space<vmem>>, vector<1x8x16xf32>
    %c0_2 = arith.constant 0 : index
    %c1 = arith.constant 1 : index
    %c0_3 = arith.constant 0 : index
    %1 = vector.load %arg1[%c0_2, %c1, %c0_3] : memref<1x9x16xf32, #tpu.memory_space<vmem>>, vector<1x8x8xf32>
    %2 = tpu.concatenate %0, %1 in 2 : vector<1x8x16xf32>, vector<1x8x8xf32> -> vector<1x8x24xf32>
    %3 = vector.shape_cast %2 : vector<1x8x24xf32> to vector<8x24xf32>
    %c0_4 = arith.constant 0 : index
    %c0_5 = arith.constant 0 : index
    %4 = vector.load %arg2[%c0_4, %c0_5] : memref<24x8xf32, #tpu.memory_space<vmem>>, vector<24x8xf32>
    %cst = arith.constant dense<0.000000e+00> : vector<8x8xf32>
    %5 = tpu.matmul %3, %4, %cst {dimension_numbers = #tpu.dot_dimension_numbers<[1], [0], [0], [1], [0, 0, 1, 1], [], []>} : vector<8x24xf32>, vector<24x8xf32>, vector<8x8xf32> -> vector<8x8xf32>
    %c0_6 = arith.constant 0 : index
    %c0_7 = arith.constant 0 : index
    %6 = vector.load %arg3[%c0_6, %c0_7] : memref<1x8xf32, #tpu.memory_space<vmem>>, vector<1x8xf32>
    %7 = vector.broadcast %6 : vector<1x8xf32> to vector<8x8xf32>
    %8 = arith.addf %5, %7 : vector<8x8xf32>
    %9 = vector.shape_cast %8 : vector<8x8xf32> to vector<1x8x8xf32>
    %c0_8 = arith.constant 0 : index
    %c0_9 = arith.constant 0 : index
    %c0_10 = arith.constant 0 : index
    %10 = vector.load %arg4[%c0_8, %c0_9, %c0_10] : memref<1x8x8xf32, #tpu.memory_space<vmem>>, vector<1x8x8xf32>
    tpu.vector_store %arg4[%c0_8, %c0_9, %c0_10], %9 {strides = array<i32>} : memref<1x8x8xf32, #tpu.memory_space<vmem>>, vector<1x8x8xf32>,
    return
  }
  func.func @transform_0(%arg0: i32) -> (i32, i32, i32) {
    %c0_i32 = arith.constant 0 : i32
    %c0_i32_0 = arith.constant 0 : i32
    %c0_i32_1 = arith.constant 0 : i32
    return %arg0, %c0_i32, %c0_i32_0 : i32, i32, i32
  }
  func.func @transform_1(%arg0: i32) -> (i32, i32) {
    %c0_i32 = arith.constant 0 : i32
    %c0_i32_0 = arith.constant 0 : i32
    %c0_i32_1 = arith.constant 0 : i32
    return %c0_i32, %c0_i32_0 : i32, i32
  }
  func.func @transform_2(%arg0: i32) -> (i32, i32) {
    %c0_i32 = arith.constant 0 : i32
    %c0_i32_0 = arith.constant 0 : i32
    %c0_i32_1 = arith.constant 0 : i32
    return %c0_i32, %c0_i32_0 : i32, i32
  }
  func.func @transform_3(%arg0: i32) -> (i32, i32, i32) {
    %c0_i32 = arith.constant 0 : i32
    %c0_i32_0 = arith.constant 0 : i32
    %c0_i32_1 = arith.constant 0 : i32
    return %arg0, %c0_i32, %c0_i32_0 : i32, i32, i32
  }
}

</mosaic_0001>

<bundles_post_ra>
// kernel: tpu_custom_call.1
= control target key start
LH: loop header
LB: loop body
LE: loop exit
PB: predicated region body
PF: predicated region fallthrough
CT: control target
= control target key end

     0   :  { %8 = vsyncpa [#allocation3], 0  ;;  %s610_s0 = inlined_call_operand.vmem [shape: f32[2,9,16], index: 0, kind: input, shape index: {}]   ;;  %s611_s1 = inlined_call_operand.vmem [shape: f32[24,8], index: 1, kind: input, shape index: {}]   ;;  %s612_s2 = inlined_call_operand.vmem [shape: f32[1,8], index: 2, kind: input, shape index: {}]   ;;  %s613_s3 = inlined_call_operand.hbm [shape: f32[2,8,8], index: 3, kind: output, shape index: {}]  }
   0x1   :  { %10 = vsyncpa [#allocation3 + $0x1], 0  ;;  %s498_s12 = smov 0   ;;  %s500_s13 = smov 0  }
   0x2   :  { %s502_s14 = smov 0   ;;  %s504_s15 = smov 0  }
   0x3 LB: > { %s519_s16 = sadd.s32 4294967295, %s471_s15   ;;  %s336_s17 = sadd.s32 4294967294, %s471_s15   ;;  %s471_s15 = sphi %s504_s15, %s619_s15   ;;  %s467_s14 = sphi %s502_s14, %s618_s14   ;;  %s463_s13 = sphi %s500_s13, %s617_s13   ;;  %s459_s12 = sphi %s498_s12, %s616_s12  }
   0x4   : > { %s523_s18 = sadd.s32 1, %s471_s15   ;;  %s91_s19 = sadd.s32 1, %s467_s14 }
   0x5   : > { %s88_s20 = ssub.s32 %s471_s15, %s523_s18  ;;  %p101_p0 = scmp.ne.s32.totalorder %s467_s14, %s463_s13 }
   0x6   : > { %p89_p1 = scmp.eq.s32.totalorder %s88_s20, 0  ;;  %p102_p2 = scmp.eq.s32.totalorder %s519_s16, 1 }
   0x7   : > { %p107_p3 = scmp.ne.s32.totalorder %s463_s13, %s459_s12  ;;  %p108_p4 = scmp.eq.s32.totalorder %s336_s17, 1 }
   0x8   : > { %s534_s21 = scalar_select %p89_p1, %s467_s14, %s91_s19  }
   0x9   : > { %p536_p5 = por %p102_p2, %p101_p0  ;;  %p540_p6 = por %p108_p4, %p107_p3 }
   0xa   : > { %p339_p7 = scmp.ge.s32.totalorder %s471_s15, 1  ;;  %p140_p8 = scmp.lt.s32.totalorder %s471_s15, 3 }
   0xc   : > { %p141_p9 = pnand %p339_p7, %p140_p8 }
   0xd   : > { %p164_p10 = scmp.lt.s32.totalorder (!%p141_p9), %s519_s16, 1  ;;  %v177_v0 = vld [vmem:[%s611_s1] sm:$0xff] (!%p141_p9)  ;;  %v178_v1 = vld [vmem:[%s611_s1 + $0x8] sm:$0xff] (!%p141_p9)  ;;  %v473_v2 = vmov (!%p141_p9), 0.0|0.0   ;;  %vm474_vm0 = vmmov (!%p141_p9), 0   ;;  %v475_v4 = vmov (!%p141_p9), 0.0  }
   0xe   : > { %144 = sbr.rel (%p141_p9) target bundleno = 370 (0x172), region = 32  ;;  %363 = vmatprep.subr.bf16.mxu0 (!%p141_p9), %v473_v2  ;;  %v364_v3 = vpack.c.bf16 (!%p141_p9), %v178_v1, %v177_v0  ;;  %360 = vmatprep.mubr.msk.f32.mxu0 (!%p141_p9), %vm474_vm0, %v475_v4  ;;  %v179_v5 = vld [vmem:[%s611_s1 + $0x10] sm:$0xff] (!%p141_p9)  ;;  %s476_s8 = smov (!%p141_p9), 16   ;;  %vm175_vm1 = vcmask (!%p141_p9), 130048   ;;  %vm187_vm2 = vcmask (!%p141_p9), 195584   ;;  %vm261_vm3 = vcmask (!%p141_p9), 64512  }
   0xf   : > { %s161_s9 = sand.u32 (!%p141_p9), 1, %s463_s13   ;;  %v343_v10 = vld [vmem:[%s612_s2] ss:$0 sm:$0xff] (!%p141_p9)  ;;  %s346_s19 = sshll.u32 (!%p141_p9), %s519_s16, 7 }
  0x10   : > { %365 = vmatpush3.bf16.msra.mxu0 (!%p141_p9), %v364_v3  ;;  %s340_s10 = sshll.u32 (!%p141_p9), %s161_s9, 3  ;;  %s568_s27 = scalar_lea.hbm (!%p141_p9), %s613_s3, %s346_s19 }
  0x11   : > { %358 = vmatprep.subr.mxu0 (!%p141_p9), %v475_v4  ;;  %s163_s20 = scalar_lea.vmem (!%p141_p9), [#allocation2], %s340_s10 }
  0x12   : > { %s277_s24 = sshll.u32 (!%p141_p9), %s163_s20, 4  ;;  %s570_s24 = int_to_ptr.vmem [resolvable:$true] %s277_s24 }
  0x14   : > { %359 = vmatpush3.msra.mxu0 (!%p141_p9), %v179_v5 }
  0x15   : > { %s165_s28 = scalar_select %p164_p10, %s519_s16, 1 }
  0x16   : > { %s477_s16 = smov [#allocation2]  }
  0x17   : > { %s349_s29 = sshll.u32 %s165_s28, 4  ;;  %s264_s28 = scalar_lea.sflag [#allocation3], %s161_s9 }
  0x18   : > { %s168_s7 = scalar_lea.vmem %s610_s0, %s349_s29  ;;  %s409_s29 = scalar_lea.vmem %s570_s24, 128 }
  0x19   : > { %v170_v6 = vld [vmem:[%s168_s7 + $0x1] sm:$0xff]  ;;  %p410_p11 = scmp.ne.s32.totalorder %s570_s24, %s409_s29  ;;  %s413_s30 = sshll.u32 %s477_s16, 4  ;;  %s414_s30 = int_to_ptr.vmem [resolvable:$false] %s413_s30 }
  0x1a   : > { %172 = vrot.lane.b32.xlu0 %v170_v6, %s476_s8  ;;  %v169_v7 = vld [vmem:[%s168_s7] sm:$0xff]  ;;  %s415_s4 = scalar_lea.vmem %s414_s30, 256  ;;  %p416_p0 = scmp.lt.s32.totalorder %s570_s24, %s414_s30 }
  0x1b   : > { %p411_p12 = pnand %p410_p11, %p536_p5  ;;  %p417_p1 = scmp.lt.s32.totalorder %s415_s4, %s409_s29 }
  0x1d   : > { %p412_p13 = pneg %p411_p12  ;;  %p418_p2 = por %p417_p1, %p416_p0 }
  0x1f   : > { %p419_p3 = pnand %p418_p2, %p412_p13 }
  0x8c   : > { %v173_v8 = vpop.permute.xlu0 %172 }
  0x8d   : > { %v176_v9 = vsel %vm175_vm1, %v169_v7, %v173_v8 }
  0x8e   : > { %361 = vmatmul.mubr.msk.f32.vlgmr.msra.gmra.mrb[0].mxu0 %vm187_vm2, %v176_v9 }
 0x161   : > { %v257_v11 = vpop.f32.mrb[0].mxu0 }
 0x162   : > { %v258_v12 = vadd.f32 %v343_v10, %v257_v11  ;;  %v362_v13 = vpop.f32.mrb[1].mxu0 }
 0x164   : > { %262 = vst.msk [vmem:[%s163_s20] sm:$0xff] %vm261_vm3, %v258_v12 }
 0x165   : > { %422 = shalt.err (!%p419_p3)
}
 0x166   : > { %s423_s5 = scalar_lea.hbm %s568_s27, 128  ;;  %s427_s8 = scalar_lea.hbm %s613_s3, 256 }
 0x167   : > { %p424_p4 = scmp.ne.s32.totalorder %s568_s27, %s423_s5  ;;  %p428_p9 = scmp.lt.u32.totalorder %s568_s27, %s613_s3 }
 0x168   : > { %p429_p10 = scmp.lt.u32.totalorder %s427_s8, %s423_s5  ;;  %p431_p12 = scmp.lt.u32.totalorder %s423_s5, %s568_s27 }
 0x169   : > { %p425_p7 = pnand %p424_p4, %p536_p5 }
 0x16a   : > { %p430_p11 = por %p429_p10, %p428_p9 }
 0x16b   : > { %p426_p8 = pneg %p425_p7 }
 0x16c   : > { %p432_p13 = por %p431_p12, %p430_p11 }
 0x16e   : > { %p433_p0 = pnand %p432_p13, %p426_p8 }
 0x170   : > { %436 = shalt.err (!%p433_p0)
}
 0x171   : > { %366 = dma.vmem_to_hbm [thread:$0]  (%p536_p5), %s570_s24, 128, %s568_s27, %s264_s28  }
 0x172 PF: > { %p372_p1 = scmp.ge.s32.totalorder %s471_s15, 2  ;;  %s289_s11 = sand.u32 1, %s459_s12  }
 0x173   : > { %s290_s17 = scalar_lea.sflag [#allocation3], %s289_s11 }
 0x174   : > { %p369_p2 = pnand %p372_p1, %p540_p6 }
 0x176   : > { %454 = dma.done.wait (!%p369_p2), %s290_s17, 128  }
 0x177   : > { %456 = vsyncadd (!%p369_p2), %s290_s17, 4294967168  ;;  %p13_p3 = scmp.ge.s32.totalorder %s523_s18, 4   ;;  %s616_s12 = smov %s463_s13 }
 0x178   : > { %s617_s13 = smov %s467_s14  ;;  %s618_s14 = smov %s534_s21 }
 0x179   : > { %s619_s15 = smov %s523_s18  ;;  %15 = sbr.rel (!%p13_p3) target bundleno = 3 (0x3), region = 67 }
 0x180   :  { %295 = vsyncpa [#allocation3], 1 }
 0x181   :  { %297 = vsyncpa [#allocation3 + $0x1], 1 }

</bundles_post_ra>
